<compile_context>
chip_gen: v7x
topology: tpu7x:2x2x1
jax: 0.10.0
libtpu: 0.0.40
codegen_flags: <defaults>
</compile_context>

<pallas_src>
import functools

import jax
import jax.numpy as jnp
from jax.experimental import pallas as pl
from jax.experimental.pallas import tpu as pltpu

IGNORE_INDEX = -100

# Conservative budget for the double-buffered logits block (fits v7x 64 MiB
# physical VMEM with headroom); scoped limit raised above the 16/32 MiB default.
_VMEM_TILE_BUDGET = 40 * 1024 * 1024
_VMEM_LIMIT_BYTES = 48 * 1024 * 1024


def _lm_loss_kernel(logits_ref, labels_ref, sums_ref, cnts_ref):
    """One row-tile of shifted tokens.

    logits_ref: (TM, V) model dtype (f32/bf16); upcast to f32 in-kernel.
    labels_ref: (TM, 1) int32, already shifted; pad rows carry IGNORE_INDEX.
    sums_ref / cnts_ref: (1, 8, 128) f32 per-tile partial outputs (lane-dense,
    unmasked stores); reduced to scalars in plain JAX by the wrapper.
    """
    x = logits_ref[...].astype(jnp.float32)               # (TM, V)
    lbl = labels_ref[...]                                  # (TM, 1) int32

    # Numerically-stable logsumexp over the vocab axis.
    m = jnp.max(x, axis=-1, keepdims=True)                 # (TM, 1)
    lse = m + jnp.log(jnp.sum(jnp.exp(x - m), axis=-1, keepdims=True))

    # Gather the logit at the label index via a one-hot compare (no dynamic
    # vreg gather on TPU).  IGNORE_INDEX never matches, so tgt = 0 there.
    col = jax.lax.broadcasted_iota(jnp.int32, x.shape, 1)
    tgt = jnp.sum(jnp.where(col == lbl, x, 0.0), axis=-1, keepdims=True)

    valid = lbl != IGNORE_INDEX                             # (TM, 1) bool
    # where() also protects against garbage logits in the (masked) pad rows of
    # a partial last block.
    per_tok = jnp.where(valid, lse - tgt, 0.0)              # (TM, 1)

    sums_ref[...] = jnp.full(sums_ref.shape, jnp.sum(per_tok), jnp.float32)
    cnts_ref[...] = jnp.full(cnts_ref.shape,
                             jnp.sum(valid.astype(jnp.float32)), jnp.float32)


def _round_up(x, m):
    return (x + m - 1) // m * m


@functools.partial(jax.jit, static_argnames=("tile_rows",))
def gpt_lm_loss(logits, labels, tile_rows=256):
    """logits: (B, T, V) float, labels: (B, T) int -> scalar float32 loss."""
    B, T, V = logits.shape
    N = B * T

    # Free reshape view of logits (no shifted/padded HBM copy).  The shift is
    # done on the labels side: row b*T + t is scored against labels[b, t+1];
    # the last position of every sequence gets IGNORE_INDEX so it drops out —
    # exactly CrossEntropyLoss(logits[..., :-1, :], labels[..., 1:]).
    flat_logits = logits.reshape(N, V)
    shift_labels = jnp.concatenate(
        [labels[:, 1:], jnp.full((B, 1), IGNORE_INDEX, labels.dtype)], axis=1)
    shift_labels = shift_labels.reshape(N, 1).astype(jnp.int32)

    # Row-tile sizing: as large as the double-buffered VMEM budget allows,
    # respecting sublane packing granularity (8 f32 / 16 bf16 / 32 int8).
    itemsize = jnp.dtype(logits.dtype).itemsize
    base = {4: 8, 2: 16, 1: 32}.get(itemsize, 8)
    max_rows = max(base,
                   (_VMEM_TILE_BUDGET // (2 * V * itemsize)) // base * base)
    tm = max(base, min(_round_up(tile_rows, base), max_rows,
                       _round_up(N, base)))
    grid = pl.cdiv(N, tm)
    n_pad = grid * tm

    # Pad only the labels (tiny).  Any logits rows read past N (partial last
    # block) carry IGNORE_INDEX labels, so they contribute nothing.
    if n_pad != N:
        shift_labels = jnp.concatenate(
            [shift_labels,
             jnp.full((n_pad - N, 1), IGNORE_INDEX, jnp.int32)], axis=0)

    sums, cnts = pl.pallas_call(
        _lm_loss_kernel,
        out_shape=(jax.ShapeDtypeStruct((grid, 8, 128), jnp.float32),
                   jax.ShapeDtypeStruct((grid, 8, 128), jnp.float32)),
        grid_spec=pltpu.PrefetchScalarGridSpec(
            num_scalar_prefetch=0,
            grid=(grid,),
            in_specs=[
                pl.BlockSpec((tm, V), lambda i: (i, 0)),
                pl.BlockSpec((tm, 1), lambda i: (i, 0)),
            ],
            out_specs=[
                pl.BlockSpec((1, 8, 128), lambda i: (i, 0, 0)),
                pl.BlockSpec((1, 8, 128), lambda i: (i, 0, 0)),
            ],
        ),
        compiler_params=pltpu.CompilerParams(
            dimension_semantics=("parallel",),
            vmem_limit_bytes=_VMEM_LIMIT_BYTES),
    )(flat_logits, shift_labels)

    # Final reduce over per-tile partials (also gives tree-like f32 summation).
    loss_sum = jnp.sum(sums[:, 0, 0])
    valid_cnt = jnp.sum(cnts[:, 0, 0])
    # Mean over non-ignored tokens (NaN if every label is ignored — matches
    # nn.CrossEntropyLoss mean reduction).
    return (loss_sum / valid_cnt).astype(jnp.float32)


def _reference_loss(logits, labels):
    """Pure-JAX reference of the exact PyTorch GPTLMLoss semantics."""
    V = logits.shape[-1]
    sl = logits[:, :-1, :].reshape(-1, V).astype(jnp.float32)
    sb = labels[:, 1:].reshape(-1)
    valid = sb != IGNORE_INDEX
    lse = jax.nn.logsumexp(sl, axis=-1)
    tgt = jnp.take_along_axis(sl, jnp.clip(sb, 0)[:, None], axis=-1)[:, 0]
    return jnp.sum(jnp.where(valid, lse - tgt, 0.0)) / jnp.sum(valid)


if __name__ == "__main__":
    key = jax.random.PRNGKey(0)

    # Small GPT-like shapes: batch=2, seq=9, vocab=512.
    B, T, V = 2, 9, 512
    k1, k2, k3 = jax.random.split(key, 3)
    logits = jax.random.normal(k1, (B, T, V), dtype=jnp.float32)
    labels = jax.random.randint(k2, (B, T), 0, V, dtype=jnp.int32)
    ignore_mask = jax.random.bernoulli(k3, 0.2, (B, T))
    labels = jnp.where(ignore_mask, IGNORE_INDEX, labels)

    loss = gpt_lm_loss(logits, labels)
    jax.block_until_ready(loss)
    ref = _reference_loss(logits, labels)
    assert jnp.allclose(loss, ref, rtol=1e-5, atol=1e-5), (loss, ref)

    # Second check: multi-tile grid with a partial last block (exercises the
    # parallel per-tile partials and the labels-only padding path).
    B2, T2 = 2, 65
    k4, k5, k6 = jax.random.split(jax.random.PRNGKey(1), 3)
    logits2 = jax.random.normal(k4, (B2, T2, V), dtype=jnp.float32)
    labels2 = jax.random.randint(k5, (B2, T2), 0, V, dtype=jnp.int32)
    labels2 = jnp.where(jax.random.bernoulli(k6, 0.2, (B2, T2)),
                        IGNORE_INDEX, labels2)
    loss2 = gpt_lm_loss(logits2, labels2, tile_rows=32)
    jax.block_until_ready(loss2)
    ref2 = _reference_loss(logits2, labels2)
    assert jnp.allclose(loss2, ref2, rtol=1e-5, atol=1e-5), (loss2, ref2)

    print("KERNEL_OK")
</pallas_src>

<mosaic_0001>
module attributes {stable_mosaic.version = 11 : i64} {
  func.func @_lm_loss_kernel(%arg0: i32, %arg1: memref<24x512xf32, #tpu.memory_space<vmem>>, %arg2: memref<24x1xi32, #tpu.memory_space<vmem>>, %arg3: memref<1x8x128xf32, #tpu.memory_space<vmem>>, %arg4: memref<1x8x128xf32, #tpu.memory_space<vmem>>) attributes {dimension_semantics = [#tpu.dimension_semantics<parallel>], iteration_bounds = array<i64: 1>, scalar_prefetch = 0 : i64, scratch_operands = 0 : i64, tpu.core_type = #tpu.core_type<tc>, window_params = [{transform_indices = @transform_0, window_bounds = array<i64: 24, 512>}, {transform_indices = @transform_1, window_bounds = array<i64: 24, 1>}, {transform_indices = @transform_2, window_bounds = array<i64: 1, 8, 128>}, {transform_indices = @transform_3, window_bounds = array<i64: 1, 8, 128>}]} {
    %c0 = arith.constant 0 : index
    %c0_0 = arith.constant 0 : index
    %0 = vector.load %arg1[%c0, %c0_0] : memref<24x512xf32, #tpu.memory_space<vmem>>, vector<24x512xf32>
    %c0_1 = arith.constant 0 : index
    %c0_2 = arith.constant 0 : index
    %1 = vector.load %arg2[%c0_1, %c0_2] : memref<24x1xi32, #tpu.memory_space<vmem>>, vector<24x1xi32>
    %cst = arith.constant dense<0xFF800000> : vector<24xf32>
    %2 = vector.multi_reduction <maximumf>, %0, %cst [1] : vector<24x512xf32> to vector<24xf32>
    %3 = vector.shape_cast %2 : vector<24xf32> to vector<24x1xf32>
    %4 = vector.broadcast %3 : vector<24x1xf32> to vector<24x512xf32>
    %5 = arith.subf %0, %4 : vector<24x512xf32>
    %6 = math.exp %5 : vector<24x512xf32>
    %cst_3 = arith.constant dense<0.000000e+00> : vector<24xf32>
    %7 = vector.multi_reduction <add>, %6, %cst_3 [1] : vector<24x512xf32> to vector<24xf32>
    %8 = vector.shape_cast %7 : vector<24xf32> to vector<24x1xf32>
    %9 = math.log %8 : vector<24x1xf32>
    %10 = arith.addf %3, %9 : vector<24x1xf32>
    %11 = tpu.iota {dimensions = array<i32: 1>} : vector<24x512xi32>
    %12 = vector.broadcast %1 : vector<24x1xi32> to vector<24x512xi32>
    %13 = arith.cmpi eq, %11, %12 : vector<24x512xi32>
    %cst_4 = arith.constant 0.000000e+00 : f32
    %14 = vector.broadcast %cst_4 : f32 to vector<24x512xf32>
    %15 = arith.select %13, %0, %14 : vector<24x512xi1>, vector<24x512xf32>
    %cst_5 = arith.constant dense<0.000000e+00> : vector<24xf32>
    %16 = vector.multi_reduction <add>, %15, %cst_5 [1] : vector<24x512xf32> to vector<24xf32>
    %17 = vector.shape_cast %16 : vector<24xf32> to vector<24x1xf32>
    %c-100_i32 = arith.constant -100 : i32
    %18 = vector.broadcast %c-100_i32 : i32 to vector<24x1xi32>
    %19 = arith.cmpi ne, %1, %18 : vector<24x1xi32>
    %20 = arith.subf %10, %17 : vector<24x1xf32>
    %cst_6 = arith.constant 0.000000e+00 : f32
    %21 = vector.broadcast %cst_6 : f32 to vector<24x1xf32>
    %22 = arith.select %19, %20, %21 : vector<24x1xi1>, vector<24x1xf32>
    %23 = vector.shape_cast %22 : vector<24x1xf32> to vector<1x24x1xf32>
    %cst_7 = arith.constant dense<0.000000e+00> : vector<1xf32>
    %24 = vector.multi_reduction <add>, %23, %cst_7 [1, 2] : vector<1x24x1xf32> to vector<1xf32>
    %25 = vector.shape_cast %24 : vector<1xf32> to vector<1x1x1xf32>
    %26 = vector.extract %25[0, 0, 0] : f32 from vector<1x1x1xf32>
    %27 = vector.broadcast %26 : f32 to vector<1x8x128xf32>
    %c0_8 = arith.constant 0 : index
    %c0_9 = arith.constant 0 : index
    %c0_10 = arith.constant 0 : index
    %28 = vector.load %arg3[%c0_8, %c0_9, %c0_10] : memref<1x8x128xf32, #tpu.memory_space<vmem>>, vector<1x8x128xf32>
    tpu.vector_store %arg3[%c0_8, %c0_9, %c0_10], %27 {strides = array<i32>} : memref<1x8x128xf32, #tpu.memory_space<vmem>>, vector<1x8x128xf32>,
    %29 = arith.extui %19 : vector<24x1xi1> to vector<24x1xi32>
    %30 = arith.sitofp %29 : vector<24x1xi32> to vector<24x1xf32>
    %31 = vector.shape_cast %30 : vector<24x1xf32> to vector<1x24x1xf32>
    %cst_11 = arith.constant dense<0.000000e+00> : vector<1xf32>
    %32 = vector.multi_reduction <add>, %31, %cst_11 [1, 2] : vector<1x24x1xf32> to vector<1xf32>
    %33 = vector.shape_cast %32 : vector<1xf32> to vector<1x1x1xf32>
    %34 = vector.extract %33[0, 0, 0] : f32 from vector<1x1x1xf32>
    %35 = vector.broadcast %34 : f32 to vector<1x8x128xf32>
    %c0_12 = arith.constant 0 : index
    %c0_13 = arith.constant 0 : index
    %c0_14 = arith.constant 0 : index
    %36 = vector.load %arg4[%c0_12, %c0_13, %c0_14] : memref<1x8x128xf32, #tpu.memory_space<vmem>>, vector<1x8x128xf32>
    tpu.vector_store %arg4[%c0_12, %c0_13, %c0_14], %35 {strides = array<i32>} : memref<1x8x128xf32, #tpu.memory_space<vmem>>, vector<1x8x128xf32>,
    return
  }
  func.func @transform_0(%arg0: i32) -> (i32, i32) {
    %c0_i32 = arith.constant 0 : i32
    %c0_i32_0 = arith.constant 0 : i32
    return %arg0, %c0_i32 : i32, i32
  }
  func.func @transform_1(%arg0: i32) -> (i32, i32) {
    %c0_i32 = arith.constant 0 : i32
    %c0_i32_0 = arith.constant 0 : i32
    return %arg0, %c0_i32 : i32, i32
  }
  func.func @transform_2(%arg0: i32) -> (i32, i32, i32) {
    %c0_i32 = arith.constant 0 : i32
    %c0_i32_0 = arith.constant 0 : i32
    %c0_i32_1 = arith.constant 0 : i32
    return %arg0, %c0_i32, %c0_i32_0 : i32, i32, i32
  }
  func.func @transform_3(%arg0: i32) -> (i32, i32, i32) {
    %c0_i32 = arith.constant 0 : i32
    %c0_i32_0 = arith.constant 0 : i32
    %c0_i32_1 = arith.constant 0 : i32
    return %arg0, %c0_i32, %c0_i32_0 : i32, i32, i32
  }
}

</mosaic_0001>

<bundles_post_ra>
// kernel: gpt_lm_loss.1
= control target key start
LH: loop header
LB: loop body
LE: loop exit
PB: predicated region body
PF: predicated region fallthrough
CT: control target
= control target key end

     0   :  { %v253_v3 = vmov 0   ;;  %v103_v26 = vlaneseq  ;;  %vm165_vm15 = vcmask 7168   ;;  %s445_s0 = inlined_call_operand.vmem [shape: f32[18,512], index: 0, kind: input, shape index: {}]   ;;  %s446_s1 = inlined_call_operand.vmem [shape: s32[24,1], index: 1, kind: input, shape index: {}]   ;;  %s447_s2 = inlined_call_operand.vmem [shape: f32[1,8,128], index: 2, kind: output, shape index: {0}]   ;;  %s448_s3 = inlined_call_operand.vmem [shape: f32[1,8,128], index: 3, kind: output, shape index: {1}]  }
   0x1   :  { %v278_v0 = vld [vmem:[%s445_s0] sm:$0xff]  ;;  %v283_v1 = vld [vmem:[%s445_s0 + $0x8] sm:$0xff]  ;;  %v288_v2 = vld [vmem:[%s445_s0 + $0x10] sm:$0xff]  ;;  %221 = vset.pattern.permute.xlu1 %v253_v3  ;;  %222 = vset.pattern.permute.xlu0 %v253_v3 }
   0x2   :  { %v293_v4 = vld [vmem:[%s445_s0 + $0x18] sm:$0xff]  ;;  %v28_v5 = vmax.f32 %v278_v0, %v288_v2  ;;  %v300_v6 = vld [vmem:[%s445_s0 + $0x40] sm:$0xff]  ;;  %v305_v7 = vld [vmem:[%s445_s0 + $0x48] sm:$0xff]  ;;  %v389_v43 = vand.u32 127, %v103_v26 }
   0x3   :  { %v29_v8 = vmax.f32 %v283_v1, %v293_v4  ;;  %v312_v9 = vld [vmem:[%s445_s0 + $0x50] sm:$0xff]  ;;  %v317_v10 = vld [vmem:[%s445_s0 + $0x58] sm:$0xff]  ;;  %v322_v11 = vld [vmem:[%s445_s0 + $0x20] sm:$0xff] }
   0x4   :  { %v38_v12 = vmax.f32 %v300_v6, %v312_v9  ;;  %v39_v13 = vmax.f32 %v305_v7, %v317_v10  ;;  %v331_v14 = vld [vmem:[%s445_s0 + $0x28] sm:$0xff]  ;;  %v336_v15 = vld [vmem:[%s445_s0 + $0x30] sm:$0xff]  ;;  %v341_v16 = vld [vmem:[%s445_s0 + $0x38] sm:$0xff]  ;;  %v105_v50 = vadd.s32 128, %v389_v43  ;;  %v106_v55 = vadd.s32 256, %v389_v43 }
   0x5   :  { %v30_v17 = vmax.f32 %v28_v5, %v29_v8  ;;  %v33_v18 = vmax.f32 %v322_v11, %v336_v15  ;;  %v34_v19 = vmax.f32 %v331_v14, %v341_v16  ;;  %v350_v22 = vld [vmem:[%s446_s1] sm:$0xff]  ;;  %v356_v23 = vld [vmem:[%s446_s1 + $0x10] sm:$0xff]  ;;  %v362_v24 = vld [vmem:[%s446_s1 + $0x8] sm:$0xff]  ;;  %v107_v60 = vadd.s32 384, %v389_v43 }
   0x6   :  { %v40_v20 = vmax.f32 %v38_v12, %v39_v13  ;;  %vm156_vm12 = vcmp.ne.s32.totalorder %v350_v22, 4294967196  ;;  %vm157_vm13 = vcmp.ne.s32.totalorder %v362_v24, 4294967196  ;;  %vm158_vm14 = vcmp.ne.s32.totalorder %v356_v23, 4294967196 }
   0x7   :  { %31 = vmax.xlane.f32.xlu0 %v30_v17  ;;  %v35_v21 = vmax.f32 %v33_v18, %v34_v19 }
   0x8   :  { %41 = vmax.xlane.f32.xlu1 %v40_v20 }
   0xb   :  { %36 = vmax.xlane.f32.xlu0 %v35_v21 }
  0x19   :  { %109 = vperm.xlu1 %221, %v350_v22  }
  0x1d   :  { %115 = vperm.xlu1 %221, %v356_v23  }
  0x21   :  { %112 = vperm.xlu0 %222, %v362_v24  }
  0x94   :  { %v365_v25 = vpop.xlane.xlu0 %31 }
  0x95   :  { %v43_v27 = vsub.f32 %v278_v0, %v365_v25  ;;  %v44_v28 = vsub.f32 %v283_v1, %v365_v25  ;;  %v45_v29 = vsub.f32 %v288_v2, %v365_v25  ;;  %v46_v30 = vsub.f32 %v293_v4, %v365_v25  ;;  %v375_v31 = vpop.xlane.xlu1 %41 }
  0x96   :  { %v51_v32 = vsub.f32 %v300_v6, %v375_v31  ;;  %v52_v33 = vsub.f32 %v305_v7, %v375_v31  ;;  %v53_v37 = vsub.f32 %v312_v9, %v375_v31  ;;  %v54_v39 = vsub.f32 %v317_v10, %v375_v31 }
  0x97   :  { %v55_v34 = vmul.f32 1.442695, %v43_v27  ;;  %v57_v35 = vmul.f32 1.442695, %v44_v28  ;;  %v59_v36 = vmul.f32 1.442695, %v45_v29 }
  0x98   :  { %v61_v38 = vmul.f32 1.442695, %v46_v30  ;;  %v385_v40 = vpop.xlane.xlu0 %36  ;;  %v71_v41 = vmul.f32 1.442695, %v51_v32  ;;  %v73_v44 = vmul.f32 1.442695, %v52_v33 }
  0x99   :  { %223 = vpow2.f32 %v55_v34  ;;  %v47_v42 = vsub.f32 %v322_v11, %v385_v40  ;;  %v48_v45 = vsub.f32 %v331_v14, %v385_v40  ;;  %v75_v46 = vmul.f32 1.442695, %v53_v37  ;;  %v110_v54 = vpop.permute.xlu1 %109 }
  0x9a   :  { %225 = vpow2.f32 %v57_v35  ;;  %v77_v47 = vmul.f32 1.442695, %v54_v39  ;;  %v49_v48 = vsub.f32 %v336_v15, %v385_v40  ;;  %v50_v51 = vsub.f32 %v341_v16, %v385_v40 }
  0x9b   :  { %227 = vpow2.f32 %v59_v36  ;;  %v63_v49 = vmul.f32 1.442695, %v47_v42  ;;  %v65_v52 = vmul.f32 1.442695, %v48_v45  ;;  %vm117_vm0 = vcmp.eq.s32.totalorder %v389_v43, %v110_v54 }
  0x9c   :  { %229 = vpow2.f32 %v61_v38  ;;  %v67_v53 = vmul.f32 1.442695, %v49_v48  ;;  %vm118_vm1 = vcmp.eq.s32.totalorder %v105_v50, %v110_v54  ;;  %v69_v56 = vmul.f32 1.442695, %v50_v51 }
  0x9d   :  { %231 = vpow2.f32 %v71_v41  ;;  %v129_v61 = vsel %vm117_vm0, %v278_v0, 0.0  ;;  %v130_v62 = vsel %vm118_vm1, %v283_v1, 0.0  ;;  %vm119_vm4 = vcmp.eq.s32.totalorder %v106_v55, %v110_v54  ;;  %v116_v12 = vpop.permute.xlu1 %115 }
  0x9e   :  { %233 = vpow2.f32 %v73_v44  ;;  %v141_v17 = vadd.f32 %v130_v62, %v129_v61  ;;  %v131_v19 = vsel %vm119_vm4, %v288_v2, 0.0  ;;  %vm120_vm5 = vcmp.eq.s32.totalorder %v107_v60, %v110_v54 }
  0x9f   :  { %235 = vpow2.f32 %v75_v46  ;;  %vm125_vm7 = vcmp.eq.s32.totalorder %v389_v43, %v116_v12  ;;  %vm126_vm8 = vcmp.eq.s32.totalorder %v105_v50, %v116_v12  ;;  %v132_v2 = vsel %vm120_vm5, %v293_v4, 0.0 }
  0xa0   :  { %237 = vpow2.f32 %v77_v47  ;;  %v113_v57 = vpop.permute.xlu0 %112  ;;  %v142_v30 = vadd.f32 %v141_v17, %v131_v19  ;;  %v137_v36 = vsel %vm125_vm7, %v300_v6, 0.0  ;;  %v138_v37 = vsel %vm126_vm8, %v305_v7, 0.0 }
  0xa1   :  { %239 = vpow2.f32 %v63_v49  ;;  %vm121_vm2 = vcmp.eq.s32.totalorder %v389_v43, %v113_v57  ;;  %vm122_vm3 = vcmp.eq.s32.totalorder %v105_v50, %v113_v57  ;;  %vm123_vm6 = vcmp.eq.s32.totalorder %v106_v55, %v113_v57 }
  0xa2   :  { %241 = vpow2.f32 %v65_v52  ;;  %v133_v20 = vsel %vm121_vm2, %v322_v11, 0.0  ;;  %v134_v0 = vsel %vm122_vm3, %v331_v14, 0.0  ;;  %v135_v11 = vsel %vm123_vm6, %v336_v15, 0.0 }
  0xa3   :  { %v224_v58 = vpop.eup %223  ;;  %243 = vpow2.f32 %v67_v53  ;;  %v146_v32 = vadd.f32 %v134_v0, %v133_v20  ;;  %vm124_vm9 = vcmp.eq.s32.totalorder %v107_v60, %v113_v57  ;;  %v143_v39 = vadd.f32 %v142_v30, %v132_v2 }
  0xa4   :  { %v226_v59 = vpop.eup %225  ;;  %245 = vpow2.f32 %v69_v56  ;;  %vm127_vm10 = vcmp.eq.s32.totalorder %v106_v55, %v116_v12  ;;  %v136_v43 = vsel %vm124_vm9, %v341_v16, 0.0  ;;  %v151_v4 = vadd.f32 %v138_v37, %v137_v36 }
  0xa5   :  { %v228_v63 = vpop.eup %227  ;;  %v79_v3 = vadd.f32 %v226_v59, %v224_v58  ;;  %v147_v41 = vadd.f32 %v146_v32, %v135_v11  ;;  %v139_v15 = vsel %vm127_vm10, %v312_v9, 0.0  ;;  %vm128_vm11 = vcmp.eq.s32.totalorder %v107_v60, %v116_v12 }
  0xa6   :  { %v230_v5 = vpop.eup %229  ;;  %v152_v46 = vadd.f32 %v151_v4, %v139_v15  ;;  %v140_v6 = vsel %vm128_vm11, %v317_v10, 0.0  ;;  %v254_v47 = vmov 0.0  }
  0xa7   :  { %v232_v8 = vpop.eup %231  ;;  %v80_v13 = vadd.f32 %v228_v63, %v79_v3  ;;  %v148_v45 = vadd.f32 %v147_v41, %v136_v43  ;;  %v212_v16 = vsel %vm156_vm12, 1.0, %v254_v47  ;;  %v213_v9 = vsel %vm157_vm13, 1.0, %v254_v47 }
  0xa8   :  { %v234_v18 = vpop.eup %233  ;;  %v153_v7 = vadd.f32 %v152_v46, %v140_v6  ;;  %v214_v10 = vsel %vm158_vm14, 1.0, %v254_v47  ;;  %v188_v48 = vsel %vm165_vm15, %v212_v16, 0.0  ;;  %v189_v49 = vsel %vm165_vm15, %v213_v9, 0.0 }
  0xa9   :  { %v236_v1 = vpop.eup %235  ;;  %v81_v21 = vadd.f32 %v230_v5, %v80_v13  ;;  %v89_v26 = vadd.f32 %v234_v18, %v232_v8  ;;  %v190_v50 = vadd.f32 %v189_v49, %v188_v48  ;;  %v191_v51 = vsel %vm165_vm15, %v214_v10, 0.0 }
  0xaa   :  { %v238_v27 = vpop.eup %237 }
  0xab   :  { %v240_v28 = vpop.eup %239  ;;  %82 = vadd.xlane.f32.xlu1 %v81_v21  ;;  %v90_v29 = vadd.f32 %v236_v1, %v89_v26  ;;  %v192_v52 = vadd.f32 %v191_v51, %v190_v50 }
  0xac   :  { %v242_v33 = vpop.eup %241 }
  0xad   :  { %v91_v14 = vadd.f32 %v238_v27, %v90_v29  ;;  %v84_v34 = vadd.f32 %v242_v33, %v240_v28  ;;  %v244_v35 = vpop.eup %243 }
  0xae   :  { %v246_v42 = vpop.eup %245 }
  0xaf   :  { %92 = vadd.xlane.f32.xlu1 %v91_v14  ;;  %v85_v38 = vadd.f32 %v244_v35, %v84_v34 }
  0xb1   :  { %v86_v44 = vadd.f32 %v246_v42, %v85_v38 }
  0xb3   :  { %87 = vadd.xlane.f32.xlu0 %v86_v44  ;;  %144 = vadd.xlane.f32.xlu1 %v143_v39 }
  0xb7   :  { %149 = vadd.xlane.f32.xlu1 %v148_v45 }
  0xbb   :  { %154 = vadd.xlane.f32.xlu1 %v153_v7 }
 0x138   :  { %v83_v53 = vpop.xlane.xlu1 %82 }
 0x139   :  { %247 = vlog2.f32 %v83_v53 }
 0x13c   :  { %v93_v54 = vpop.xlane.xlu1 %92 }
 0x13d   :  { %249 = vlog2.f32 %v93_v54 }
 0x140   :  { %v88_v55 = vpop.xlane.xlu0 %87  ;;  %v145_v56 = vpop.xlane.xlu1 %144 }
 0x141   :  { %251 = vlog2.f32 %v88_v55 }
 0x143   :  { %v248_v57 = vpop.eup %247 }
 0x144   :  { %v95_v58 = vmul.f32 0.6931472, %v248_v57  ;;  %v150_v60 = vpop.xlane.xlu1 %149 }
 0x146   :  { %v100_v62 = vadd.f32 %v95_v58, %v365_v25 }
 0x147   :  { %v250_v59 = vpop.eup %249 }
 0x148   :  { %v99_v61 = vmul.f32 0.6931472, %v250_v59  ;;  %v159_v8 = vsub.f32 %v100_v62, %v145_v56  ;;  %v155_v12 = vpop.xlane.xlu1 %154 }
 0x14a   :  { %v102_v63 = vadd.f32 %v99_v61, %v375_v31  ;;  %v162_v18 = vsel %vm156_vm12, %v159_v8, 0.0 }
 0x14b   :  { %v252_v3 = vpop.eup %251  ;;  %v166_v25 = vsel %vm165_vm15, %v162_v18, 0.0 }
 0x14c   :  { %v97_v5 = vmul.f32 0.6931472, %v252_v3  ;;  %v161_v17 = vsub.f32 %v102_v63, %v155_v12 }
 0x14e   :  { %v101_v13 = vadd.f32 %v97_v5, %v385_v40  ;;  %v164_v0 = vsel %vm158_vm14, %v161_v17, 0.0 }
 0x14f   :  { %v169_v21 = vsel %vm165_vm15, %v164_v0, 0.0 }
 0x150   :  { %v160_v19 = vsub.f32 %v101_v13, %v150_v60 }
 0x152   :  { %v163_v20 = vsel %vm157_vm13, %v160_v19, 0.0 }
 0x153   :  { %v167_v31 = vsel %vm165_vm15, %v163_v20, 0.0 }
 0x154   :  { %v168_v1 = vadd.f32 %v167_v31, %v166_v25 }
 0x156   :  { %v170_v26 = vadd.f32 %v169_v21, %v168_v1 }
 0x158   :  { %171 = vadd.xlane.f32.xlu1 %v170_v26 }
 0x15c   :  { %193 = vadd.xlane.f32.xlu1 %v192_v52 }
 0x1e5   :  { %v172_v40 = vpop.xlane.xlu1 %171 }
 0x1e6   :  { %v173_v22 = vrot.slane %v172_v40, 4 }
 0x1e8   :  { %v174_v27 = vadd.f32 %v173_v22, %v172_v40 }
 0x1e9   :  { %v194_v28 = vpop.xlane.xlu1 %193 }
 0x1ea   :  { %v175_v29 = vrot.slane %v174_v27, 2  ;;  %v195_v24 = vrot.slane %v194_v28, 4 }
 0x1ec   :  { %v196_v30 = vadd.f32 %v195_v24, %v194_v28  ;;  %v176_v32 = vadd.f32 %v175_v29, %v174_v27 }
 0x1ee   :  { %v197_v23 = vrot.slane %v196_v30, 2  ;;  %v177_v33 = vrot.slane %v176_v32, 1 }
 0x1f0   :  { %v198_v2 = vadd.f32 %v197_v23, %v196_v30  ;;  %v178_v11 = vadd.f32 %v177_v33, %v176_v32 }
 0x1f2   :  { %215 = vpush %v178_v11  ;;  %v199_v14 = vrot.slane %v198_v2, 1 }
 0x1f4   :  { %v200_v34 = vadd.f32 %v199_v14, %v198_v2 }
 0x1f6   :  { %217 = vpush %v200_v34 }
 0x223   :  { %s216_s1 = spop %215 }
 0x224   :  { %v180_v35 = vstv %s216_s1 }
 0x225   :  { %181 = vst [vmem:[%s447_s2] sm:$0xff] %v180_v35 }
 0x227   :  { %s218_s16 = spop %217 }
 0x228   :  { %v202_v36 = vstv %s218_s16 }
 0x229   :  { %203 = vst [vmem:[%s448_s3] sm:$0xff] %v202_v36 }

</bundles_post_ra>
